<compile_context>
chip_gen: v7x
topology: tpu7x:2x2x1
jax: 0.10.0
libtpu: 0.0.40
codegen_flags: <defaults>
</compile_context>

<pallas_src>
import functools

import jax
import jax.numpy as jnp
from jax.experimental import pallas as pl
from jax.experimental.pallas import tpu as pltpu


def _softplus(x):
    # log(1 + exp(x)) using only exp/log/max/abs (robust Mosaic lowering,
    # no overflow, exact as x -> +inf).
    return jnp.maximum(x, 0.0) + jnp.log(1.0 + jnp.exp(-jnp.abs(x)))


def _survival_loss_kernel(x_ref, c_ref, t_ref, out_ref, acc_ref, *,
                          alpha, eps, batch, tile_b, n_inner):
    p = pl.program_id(0)          # parallel slice (TensorCore on v7x)
    i = pl.program_id(1)          # inner reduction step

    @pl.when(i == 0)
    def _init():
        acc_ref[...] = jnp.zeros_like(acc_ref)

    # [TILE_B, K] -> [K, TILE_B]: batch on the 128-wide lane axis (dense VPU),
    # time bins on sublanes.  One XLU transpose per tile.
    xt = jnp.transpose(x_ref[...].astype(jnp.float32))
    c = c_ref[...].astype(jnp.float32)          # [1, TILE_B] censor flag
    t = t_ref[...]                              # [1, TILE_B] event-bin index
    K, TB = xt.shape

    j = jax.lax.broadcasted_iota(jnp.int32, (K, TB), 0)
    log_eps = jnp.log(jnp.float32(eps))

    # log(1 - h) = log(1 - sigmoid(x)) = -softplus(x)  (exact, no cancellation)
    log_1mh = -_softplus(xt)
    # cumprod + gather of the reference, in log space:
    #   log S_bar[t] = sum_{j<t} log(1 - h_j)
    logS_bar_raw = jnp.sum(jnp.where(j < t, log_1mh, 0.0), axis=0, keepdims=True)
    # gather the *logit* at t; sigmoid/log only on the [1, TILE_B] strip.
    x_t = jnp.sum(jnp.where(j == t, xt, 0.0), axis=0, keepdims=True)

    # clamp(P, eps) followed by log  ==  max(log P, log eps)   (log monotonic)
    logh     = jnp.maximum(-_softplus(-x_t), log_eps)               # log h_t
    logS_bar = jnp.maximum(logS_bar_raw, log_eps)
    logS     = jnp.maximum(logS_bar_raw - _softplus(x_t), log_eps)  # S = S_bar*(1-h_t)

    term = (1.0 - c) * (logh + logS_bar) + (1.0 - alpha) * (c * logS)

    # Mask ragged / overflow tail by global batch index (where => NaN-safe).
    g = p * n_inner + i
    col = jax.lax.broadcasted_iota(jnp.int32, (1, TB), 1) + g * tile_b
    acc_ref[...] += jnp.where(col < batch, term, 0.0)

    @pl.when(i == n_inner - 1)
    def _finalize():
        out_ref[...] = jnp.full(out_ref.shape, jnp.sum(acc_ref[...]), jnp.float32)


def _vmem_capacity_bytes():
    try:
        info = pltpu.get_tpu_info()
        for name in ("vmem_capacity_bytes", "vmem_size_bytes", "vmem_bytes"):
            v = getattr(info, name, None)
            if v:
                return int(v)
    except Exception:
        pass
    return 64 << 20  # conservative fallback: v7x per-core VMEM


def survival_loss(out, c, t, *, alpha, eps=1e-7, tile_b=None):
    """out: [B, K] logits (f32 or bf16), c: [B]/[B,1] censor flags, t: [B] bins."""
    B, K = out.shape
    x_bytes = jnp.dtype(out.dtype).itemsize
    k_lane = max(pl.cdiv(K, 128) * 128, 128)   # lane padding of the (TILE_B, K) block
    k_sub = max(pl.cdiv(K, 8) * 8, 8)          # sublane padding of [K, TILE_B] temps

    vmem_cap = _vmem_capacity_bytes()
    if tile_b is None:
        # VMEM bytes per batch column: double-buffered x block (lane padded),
        # double-buffered c/t strips, ~6 live [K, TILE_B] f32 temporaries, acc row.
        per_col = (2 * k_lane * x_bytes) + (2 * 2 * 8 * 4) + (6 * k_sub * 4) + (8 * 4)
        budget = (vmem_cap * 7) // 16          # ~44% of VMEM for the tile working set
        tile_b = max(128, min(65536, (budget // per_col) // 128 * 128))
    vmem_limit = int(max(32 << 20, min(vmem_cap - (16 << 20), 112 << 20)))

    x2 = out
    c2 = jnp.reshape(c, (1, B)).astype(jnp.float32)
    t2 = jnp.reshape(t, (1, B)).astype(jnp.int32)

    if B < tile_b:
        # Small batch: shrink the tile and pad (cheap here); single exact tile.
        tile_b = max(128, pl.cdiv(B, 128) * 128)
        pad = tile_b - B
        x2 = jnp.pad(x2, ((0, pad), (0, 0)))
        c2 = jnp.pad(c2, ((0, 0), (0, pad)))
        t2 = jnp.pad(t2, ((0, 0), (0, pad)))

    tiles_total = pl.cdiv(B, tile_b)
    n_split = 2 if tiles_total >= 2 else 1     # v7x: one parallel slice per TensorCore
    n_inner = pl.cdiv(tiles_total, n_split)
    last = tiles_total - 1

    def x_map(p, i):
        return (jnp.minimum(p * n_inner + i, last), 0)

    def strip_map(p, i):
        return (0, jnp.minimum(p * n_inner + i, last))

    kernel = functools.partial(
        _survival_loss_kernel, alpha=float(alpha), eps=float(eps),
        batch=B, tile_b=tile_b, n_inner=n_inner)

    partials = pl.pallas_call(
        kernel,
        out_shape=jax.ShapeDtypeStruct((n_split, 8, 128), jnp.float32),
        grid=(n_split, n_inner),
        in_specs=[
            pl.BlockSpec((tile_b, K), x_map),      # logits, straight [B, K] from HBM
            pl.BlockSpec((1, tile_b), strip_map),  # censor flags
            pl.BlockSpec((1, tile_b), strip_map),  # event-bin indices
        ],
        out_specs=pl.BlockSpec((1, 8, 128), lambda p, i: (p, 0, 0)),
        scratch_shapes=[pltpu.VMEM((1, tile_b), jnp.float32)],
        compiler_params=pltpu.CompilerParams(
            dimension_semantics=("parallel", "arbitrary"),
            vmem_limit_bytes=vmem_limit),
    )(x2, c2, t2)

    return -jnp.sum(partials[:, 0, 0]) / B


def survival_loss_ref(out, c, t, *, alpha, eps=1e-7):
    """Pure-JAX reference mirroring the PyTorch forward."""
    out = out.astype(jnp.float32)
    c = jnp.reshape(c.astype(jnp.float32), (out.shape[0], 1))
    t = jnp.reshape(t.astype(jnp.int32), (out.shape[0], 1))
    h = jax.nn.sigmoid(out)
    S = jnp.cumprod(1.0 - h, axis=-1)
    S_bar = jnp.concatenate([jnp.ones_like(t, dtype=S.dtype), S], axis=-1)
    S_g = jnp.maximum(jnp.take_along_axis(S, t, axis=-1), eps)
    h_g = jnp.maximum(jnp.take_along_axis(h, t, axis=-1), eps)
    Sb_g = jnp.maximum(jnp.take_along_axis(S_bar, t, axis=-1), eps)
    logS = jnp.log(S_g) * c
    logSb = jnp.log(Sb_g) * (1.0 - c)
    logh = jnp.log(h_g) * (1.0 - c)
    L_z = -jnp.mean(logh + logSb)
    L_censored = -jnp.mean(logS)
    return L_z + (1.0 - alpha) * L_censored


if __name__ == "__main__":
    alpha = 0.3
    key = jax.random.PRNGKey(0)

    # Small shapes matching the module: batch of 8 patients, 16 time bins.
    B, K = 8, 16
    k1, k2, k3, k4, k5, k6 = jax.random.split(key, 6)
    out = jax.random.normal(k1, (B, K), dtype=jnp.float32)
    c = (jax.random.uniform(k2, (B,)) < 0.4).astype(jnp.float32)
    t = jax.random.randint(k3, (B,), 0, K, dtype=jnp.int32)

    loss = jax.block_until_ready(survival_loss(out, c, t, alpha=alpha))
    ref = survival_loss_ref(out, c, t, alpha=alpha)
    assert jnp.allclose(loss, ref, rtol=1e-4, atol=1e-5), (loss, ref)

    # Second check: multi-tile grid, ragged last tile, 2-way parallel split.
    B2 = 1000
    out2 = jax.random.normal(k4, (B2, K), dtype=jnp.float32)
    c2 = (jax.random.uniform(k5, (B2,)) < 0.4).astype(jnp.float32)
    t2 = jax.random.randint(k6, (B2,), 0, K, dtype=jnp.int32)

    loss2 = jax.block_until_ready(survival_loss(out2, c2, t2, alpha=alpha, tile_b=128))
    ref2 = survival_loss_ref(out2, c2, t2, alpha=alpha)
    assert jnp.allclose(loss2, ref2, rtol=2e-4, atol=1e-5), (loss2, ref2)

    print("KERNEL_OK")
</pallas_src>

<mosaic_0001>
module attributes {stable_mosaic.version = 11 : i64} {
  func.func @_survival_loss_kernel(%arg0: i32, %arg1: i32, %arg2: memref<128x16xf32, #tpu.memory_space<vmem>>, %arg3: memref<1x128xf32, #tpu.memory_space<vmem>>, %arg4: memref<1x128xi32, #tpu.memory_space<vmem>>, %arg5: memref<1x8x128xf32, #tpu.memory_space<vmem>>, %arg6: memref<1x128xf32, #tpu.memory_space<vmem>>) attributes {dimension_semantics = [#tpu.dimension_semantics<parallel>, #tpu.dimension_semantics<arbitrary>], iteration_bounds = array<i64: 1, 1>, scalar_prefetch = 0 : i64, scratch_operands = 1 : i64, tpu.core_type = #tpu.core_type<tc>, window_params = [{transform_indices = @transform_0, window_bounds = array<i64: 128, 16>}, {transform_indices = @transform_1, window_bounds = array<i64: 1, 128>}, {transform_indices = @transform_2, window_bounds = array<i64: 1, 128>}, {transform_indices = @transform_3, window_bounds = array<i64: 1, 8, 128>}]} {
    %c0_i32 = arith.constant 0 : i32
    %0 = arith.cmpi eq, %arg1, %c0_i32 : i32
    %1 = arith.extui %0 : i1 to i32
    %c0_i32_0 = arith.constant 0 : i32
    %2 = arith.cmpi ne, %1, %c0_i32_0 : i32
    scf.if %2 {
      %cst_31 = arith.constant 0.000000e+00 : f32
      %88 = vector.broadcast %cst_31 : f32 to vector<1x128xf32>
      %c0_32 = arith.constant 0 : index
      %c0_33 = arith.constant 0 : index
      %89 = vector.load %arg6[%c0_32, %c0_33] : memref<1x128xf32, #tpu.memory_space<vmem>>, vector<1x128xf32>
      tpu.vector_store %arg6[%c0_32, %c0_33], %88 {strides = array<i32>} : memref<1x128xf32, #tpu.memory_space<vmem>>, vector<1x128xf32>,
    } else {
    }
    %c0 = arith.constant 0 : index
    %c0_1 = arith.constant 0 : index
    %3 = vector.load %arg2[%c0, %c0_1] : memref<128x16xf32, #tpu.memory_space<vmem>>, vector<128x16xf32>
    %4 = tpu.transpose %3, [1, 0] : vector<128x16xf32> -> vector<16x128xf32>
    %c0_2 = arith.constant 0 : index
    %c0_3 = arith.constant 0 : index
    %5 = vector.load %arg3[%c0_2, %c0_3] : memref<1x128xf32, #tpu.memory_space<vmem>>, vector<1x128xf32>
    %c0_4 = arith.constant 0 : index
    %c0_5 = arith.constant 0 : index
    %6 = vector.load %arg4[%c0_4, %c0_5] : memref<1x128xi32, #tpu.memory_space<vmem>>, vector<1x128xi32>
    %7 = tpu.iota {dimensions = array<i32: 0>} : vector<16x128xi32>
    %cst = arith.constant 1.000000e-07 : f32
    %8 = math.log %cst : f32
    %cst_6 = arith.constant 0.000000e+00 : f32
    %9 = vector.broadcast %cst_6 : f32 to vector<16x128xf32>
    %10 = arith.maximumf %4, %9 : vector<16x128xf32>
    %11 = math.absf %4 : vector<16x128xf32>
    %cst_7 = arith.constant 0.000000e+00 : f32
    %12 = vector.broadcast %cst_7 : f32 to vector<16x128xf32>
    %13 = arith.subf %12, %11 : vector<16x128xf32>
    %14 = math.exp %13 : vector<16x128xf32>
    %cst_8 = arith.constant 1.000000e+00 : f32
    %15 = vector.broadcast %cst_8 : f32 to vector<16x128xf32>
    %16 = arith.addf %15, %14 : vector<16x128xf32>
    %17 = math.log %16 : vector<16x128xf32>
    %18 = arith.addf %10, %17 : vector<16x128xf32>
    %cst_9 = arith.constant 0.000000e+00 : f32
    %19 = vector.broadcast %cst_9 : f32 to vector<16x128xf32>
    %20 = arith.subf %19, %18 : vector<16x128xf32>
    %21 = vector.broadcast %6 : vector<1x128xi32> to vector<16x128xi32>
    %22 = arith.cmpi slt, %7, %21 : vector<16x128xi32>
    %cst_10 = arith.constant 0.000000e+00 : f32
    %23 = vector.broadcast %cst_10 : f32 to vector<16x128xf32>
    %24 = arith.select %22, %20, %23 : vector<16x128xi1>, vector<16x128xf32>
    %cst_11 = arith.constant dense<0.000000e+00> : vector<128xf32>
    %25 = vector.multi_reduction <add>, %24, %cst_11 [0] : vector<16x128xf32> to vector<128xf32>
    %26 = vector.shape_cast %25 : vector<128xf32> to vector<1x128xf32>
    %27 = vector.broadcast %6 : vector<1x128xi32> to vector<16x128xi32>
    %28 = arith.cmpi eq, %7, %27 : vector<16x128xi32>
    %cst_12 = arith.constant 0.000000e+00 : f32
    %29 = vector.broadcast %cst_12 : f32 to vector<16x128xf32>
    %30 = arith.select %28, %4, %29 : vector<16x128xi1>, vector<16x128xf32>
    %cst_13 = arith.constant dense<0.000000e+00> : vector<128xf32>
    %31 = vector.multi_reduction <add>, %30, %cst_13 [0] : vector<16x128xf32> to vector<128xf32>
    %32 = vector.shape_cast %31 : vector<128xf32> to vector<1x128xf32>
    %cst_14 = arith.constant 0.000000e+00 : f32
    %33 = vector.broadcast %cst_14 : f32 to vector<1x128xf32>
    %34 = arith.subf %33, %32 : vector<1x128xf32>
    %cst_15 = arith.constant 0.000000e+00 : f32
    %35 = vector.broadcast %cst_15 : f32 to vector<1x128xf32>
    %36 = arith.maximumf %34, %35 : vector<1x128xf32>
    %37 = math.absf %34 : vector<1x128xf32>
    %cst_16 = arith.constant 0.000000e+00 : f32
    %38 = vector.broadcast %cst_16 : f32 to vector<1x128xf32>
    %39 = arith.subf %38, %37 : vector<1x128xf32>
    %40 = math.exp %39 : vector<1x128xf32>
    %cst_17 = arith.constant 1.000000e+00 : f32
    %41 = vector.broadcast %cst_17 : f32 to vector<1x128xf32>
    %42 = arith.addf %41, %40 : vector<1x128xf32>
    %43 = math.log %42 : vector<1x128xf32>
    %44 = arith.addf %36, %43 : vector<1x128xf32>
    %cst_18 = arith.constant 0.000000e+00 : f32
    %45 = vector.broadcast %cst_18 : f32 to vector<1x128xf32>
    %46 = arith.subf %45, %44 : vector<1x128xf32>
    %47 = vector.broadcast %8 : f32 to vector<1x128xf32>
    %48 = arith.maximumf %46, %47 : vector<1x128xf32>
    %49 = vector.broadcast %8 : f32 to vector<1x128xf32>
    %50 = arith.maximumf %26, %49 : vector<1x128xf32>
    %cst_19 = arith.constant 0.000000e+00 : f32
    %51 = vector.broadcast %cst_19 : f32 to vector<1x128xf32>
    %52 = arith.maximumf %32, %51 : vector<1x128xf32>
    %53 = math.absf %32 : vector<1x128xf32>
    %cst_20 = arith.constant 0.000000e+00 : f32
    %54 = vector.broadcast %cst_20 : f32 to vector<1x128xf32>
    %55 = arith.subf %54, %53 : vector<1x128xf32>
    %56 = math.exp %55 : vector<1x128xf32>
    %cst_21 = arith.constant 1.000000e+00 : f32
    %57 = vector.broadcast %cst_21 : f32 to vector<1x128xf32>
    %58 = arith.addf %57, %56 : vector<1x128xf32>
    %59 = math.log %58 : vector<1x128xf32>
    %60 = arith.addf %52, %59 : vector<1x128xf32>
    %61 = arith.subf %26, %60 : vector<1x128xf32>
    %62 = vector.broadcast %8 : f32 to vector<1x128xf32>
    %63 = arith.maximumf %61, %62 : vector<1x128xf32>
    %cst_22 = arith.constant 1.000000e+00 : f32
    %64 = vector.broadcast %cst_22 : f32 to vector<1x128xf32>
    %65 = arith.subf %64, %5 : vector<1x128xf32>
    %66 = arith.addf %48, %50 : vector<1x128xf32>
    %67 = arith.mulf %65, %66 : vector<1x128xf32>
    %68 = arith.mulf %5, %63 : vector<1x128xf32>
    %cst_23 = arith.constant 0.699999988 : f32
    %69 = vector.broadcast %cst_23 : f32 to vector<1x128xf32>
    %70 = arith.mulf %69, %68 : vector<1x128xf32>
    %71 = arith.addf %67, %70 : vector<1x128xf32>
    %c1_i32 = arith.constant 1 : i32
    %72 = arith.muli %arg0, %c1_i32 : i32
    %73 = arith.addi %72, %arg1 : i32
    %74 = tpu.iota {dimensions = array<i32: 1>} : vector<1x128xi32>
    %c128_i32 = arith.constant 128 : i32
    %75 = arith.muli %73, %c128_i32 : i32
    %76 = vector.broadcast %75 : i32 to vector<1x128xi32>
    %77 = arith.addi %74, %76 : vector<1x128xi32>
    %c0_24 = arith.constant 0 : index
    %c0_25 = arith.constant 0 : index
    %78 = vector.load %arg6[%c0_24, %c0_25] : memref<1x128xf32, #tpu.memory_space<vmem>>, vector<1x128xf32>
    %c8_i32 = arith.constant 8 : i32
    %79 = vector.broadcast %c8_i32 : i32 to vector<1x128xi32>
    %80 = arith.cmpi slt, %77, %79 : vector<1x128xi32>
    %cst_26 = arith.constant 0.000000e+00 : f32
    %81 = vector.broadcast %cst_26 : f32 to vector<1x128xf32>
    %82 = arith.select %80, %71, %81 : vector<1x128xi1>, vector<1x128xf32>
    %83 = arith.addf %78, %82 : vector<1x128xf32>
    %c0_27 = arith.constant 0 : index
    %c0_28 = arith.constant 0 : index
    %84 = vector.load %arg6[%c0_27, %c0_28] : memref<1x128xf32, #tpu.memory_space<vmem>>, vector<1x128xf32>
    tpu.vector_store %arg6[%c0_27, %c0_28], %83 {strides = array<i32>} : memref<1x128xf32, #tpu.memory_space<vmem>>, vector<1x128xf32>,
    %c0_i32_29 = arith.constant 0 : i32
    %85 = arith.cmpi eq, %arg1, %c0_i32_29 : i32
    %86 = arith.extui %85 : i1 to i32
    %c0_i32_30 = arith.constant 0 : i32
    %87 = arith.cmpi ne, %86, %c0_i32_30 : i32
    scf.if %87 {
      %c0_31 = arith.constant 0 : index
      %c0_32 = arith.constant 0 : index
      %88 = vector.load %arg6[%c0_31, %c0_32] : memref<1x128xf32, #tpu.memory_space<vmem>>, vector<1x128xf32>
      %89 = vector.shape_cast %88 : vector<1x128xf32> to vector<1x1x128xf32>
      %cst_33 = arith.constant dense<0.000000e+00> : vector<1xf32>
      %90 = vector.multi_reduction <add>, %89, %cst_33 [1, 2] : vector<1x1x128xf32> to vector<1xf32>
      %91 = vector.shape_cast %90 : vector<1xf32> to vector<1x1x1xf32>
      %92 = vector.extract %91[0, 0, 0] : f32 from vector<1x1x1xf32>
      %93 = vector.broadcast %92 : f32 to vector<1x8x128xf32>
      %c0_34 = arith.constant 0 : index
      %c0_35 = arith.constant 0 : index
      %c0_36 = arith.constant 0 : index
      %94 = vector.load %arg5[%c0_34, %c0_35, %c0_36] : memref<1x8x128xf32, #tpu.memory_space<vmem>>, vector<1x8x128xf32>
      tpu.vector_store %arg5[%c0_34, %c0_35, %c0_36], %93 {strides = array<i32>} : memref<1x8x128xf32, #tpu.memory_space<vmem>>, vector<1x8x128xf32>,
    } else {
    }
    return
  }
  func.func @transform_0(%arg0: i32, %arg1: i32) -> (i32, i32) {
    %c1_i32 = arith.constant 1 : i32
    %0 = arith.muli %arg0, %c1_i32 : i32
    %1 = arith.addi %0, %arg1 : i32
    %c0_i32 = arith.constant 0 : i32
    %2 = arith.minsi %1, %c0_i32 : i32
    %c0_i32_0 = arith.constant 0 : i32
    %c0_i32_1 = arith.constant 0 : i32
    return %2, %c0_i32_0 : i32, i32
  }
  func.func @transform_1(%arg0: i32, %arg1: i32) -> (i32, i32) {
    %c1_i32 = arith.constant 1 : i32
    %0 = arith.muli %arg0, %c1_i32 : i32
    %1 = arith.addi %0, %arg1 : i32
    %c0_i32 = arith.constant 0 : i32
    %2 = arith.minsi %1, %c0_i32 : i32
    %c0_i32_0 = arith.constant 0 : i32
    %c0_i32_1 = arith.constant 0 : i32
    return %c0_i32_0, %2 : i32, i32
  }
  func.func @transform_2(%arg0: i32, %arg1: i32) -> (i32, i32) {
    %c1_i32 = arith.constant 1 : i32
    %0 = arith.muli %arg0, %c1_i32 : i32
    %1 = arith.addi %0, %arg1 : i32
    %c0_i32 = arith.constant 0 : i32
    %2 = arith.minsi %1, %c0_i32 : i32
    %c0_i32_0 = arith.constant 0 : i32
    %c0_i32_1 = arith.constant 0 : i32
    return %c0_i32_0, %2 : i32, i32
  }
  func.func @transform_3(%arg0: i32, %arg1: i32) -> (i32, i32, i32) {
    %c0_i32 = arith.constant 0 : i32
    %c0_i32_0 = arith.constant 0 : i32
    %c0_i32_1 = arith.constant 0 : i32
    return %arg0, %c0_i32, %c0_i32_0 : i32, i32, i32
  }
}

</mosaic_0001>

<bundles_post_ra>
// kernel: tpu_custom_call.1
= control target key start
LH: loop header
LB: loop body
LE: loop exit
PB: predicated region body
PF: predicated region fallthrough
CT: control target
= control target key end

     0   :  { %s418_s0 = inlined_call_operand.vmem [shape: f32[128,16], index: 0, kind: input, shape index: {}]   ;;  %s419_s1 = inlined_call_operand.vmem [shape: f32[1,128], index: 1, kind: input, shape index: {}]   ;;  %s420_s2 = inlined_call_operand.vmem [shape: s32[1,128], index: 2, kind: input, shape index: {}]   ;;  %s421_s3 = inlined_call_operand.hbm [shape: f32[1,8,128], index: 3, kind: output, shape index: {}]  }
   0x1   :  { %v100_v0 = vld [vmem:[%s418_s0] sm:$0xff]  ;;  %v101_v1 = vld [vmem:[%s418_s0 + $0x8] sm:$0xff] }
   0x2   :  { %116 = vxpose.xlu0.b32.start [1/16] (narrow) %v100_v0, 16 }
   0x6   :  { %117 = vxpose.xlu0.b32.cont [2/16] (narrow) %v101_v1, 16 }
   0x7   :  { %8 = vsyncpa [#allocation4], 0  ;;  %v102_v2 = vld [vmem:[%s418_s0 + $0x10] sm:$0xff]  ;;  %v103_v3 = vld [vmem:[%s418_s0 + $0x18] sm:$0xff]  ;;  %v328_v11 = vmov 0.0   ;;  %v150_v17 = vlaneseq  ;;  %vm244_vm5 = vcmask 1040384  }
   0x8   :  { %v104_v4 = vld [vmem:[%s418_s0 + $0x20] sm:$0xff]  ;;  %v105_v5 = vld [vmem:[%s418_s0 + $0x28] sm:$0xff]  ;;  %v106_v6 = vld [vmem:[%s418_s0 + $0x30] sm:$0xff]  ;;  %99 = vst [vmem:[#allocation2] sm:$0x1] %v328_v11 }
   0x9   :  { %v107_v7 = vld [vmem:[%s418_s0 + $0x38] sm:$0xff]  ;;  %v108_v8 = vld [vmem:[%s418_s0 + $0x40] sm:$0xff]  ;;  %v109_v9 = vld [vmem:[%s418_s0 + $0x48] sm:$0xff]  ;;  %v151_v18 = vshrl.u32 %v150_v17, 7 }
   0xa   :  { %118 = vxpose.xlu0.b32.cont [3/16] (narrow) %v102_v2, 16  ;;  %v110_v10 = vld [vmem:[%s418_s0 + $0x50] sm:$0xff]  ;;  %v111_v12 = vld [vmem:[%s418_s0 + $0x58] sm:$0xff]  ;;  %v112_v13 = vld [vmem:[%s418_s0 + $0x60] sm:$0xff] }
   0xb   :  { %v113_v14 = vld [vmem:[%s418_s0 + $0x68] sm:$0xff]  ;;  %v114_v15 = vld [vmem:[%s418_s0 + $0x70] sm:$0xff]  ;;  %v115_v16 = vld [vmem:[%s418_s0 + $0x78] sm:$0xff]  ;;  %v152_v19 = vadd.s32 8, %v151_v18 }
   0xc   :  { %v283_v20 = vld [vmem:[%s420_s2] ss:$0 sm:$0xff] }
   0xd   :  { %vm188_vm0 = vcmp.eq.s32.totalorder %v151_v18, %v283_v20  ;;  %vm189_vm1 = vcmp.eq.s32.totalorder %v152_v19, %v283_v20  ;;  %vm177_vm2 = vcmp.lt.s32.totalorder %v151_v18, %v283_v20  ;;  %vm178_vm3 = vcmp.lt.s32.totalorder %v152_v19, %v283_v20 }
   0xe   :  { %119 = vxpose.xlu0.b32.cont [4/16] (narrow) %v103_v3, 16 }
  0x12   :  { %120 = vxpose.xlu0.b32.cont [5/16] (narrow) %v104_v4, 16 }
  0x16   :  { %121 = vxpose.xlu0.b32.cont [6/16] (narrow) %v105_v5, 16 }
  0x1a   :  { %122 = vxpose.xlu0.b32.cont [7/16] (narrow) %v106_v6, 16 }
  0x1e   :  { %123 = vxpose.xlu0.b32.cont [8/16] (narrow) %v107_v7, 16 }
  0x22   :  { %124 = vxpose.xlu0.b32.cont [9/16] (narrow) %v108_v8, 16 }
  0x26   :  { %125 = vxpose.xlu0.b32.cont [10/16] (narrow) %v109_v9, 16 }
  0x2a   :  { %126 = vxpose.xlu0.b32.cont [11/16] (narrow) %v110_v10, 16 }
  0x2e   :  { %127 = vxpose.xlu0.b32.cont [12/16] (narrow) %v111_v12, 16 }
  0x32   :  { %128 = vxpose.xlu0.b32.cont [13/16] (narrow) %v112_v13, 16  ;;  %v148_v13 = vld [vmem:[%s419_s1] sm:$0x1]  ;;  %s329_s1 = smov [#allocation3]  }
  0x33   :  { %v223_v20 = vsub.f32 1.0, %v148_v13  ;;  %s263_s19 = sshll.u32 %s329_s1, 4  ;;  %s264_s19 = int_to_ptr.vmem [resolvable:$true] %s263_s19 }
  0x34   :  { %s304_s21 = scalar_lea.vmem %s264_s19, 128  ;;  %p309_p1 = scmp.lt.s32.totalorder %s264_s19, %s264_s19 }
  0x35   :  { %p305_p0 = scmp.ne.s32.totalorder %s264_s19, %s304_s21  ;;  %p310_p2 = scmp.lt.s32.totalorder %s304_s21, %s304_s21 }
  0x36   :  { %129 = vxpose.xlu0.b32.cont [14/16] (narrow) %v113_v14, 16 }
  0x37   :  { %p311_p3 = por %p310_p2, %p309_p1 }
  0x39   :  { %p312_p4 = pnand %p311_p3, %p305_p0 }
  0x3a   :  { %130 = vxpose.xlu0.b32.cont [15/16] (narrow) %v114_v15, 16 }
  0x3e   :  { %131 = vxpose.xlu0.b32.end [16/16] (narrow) %v115_v16, 16 }
  0x82   :  { %v132_v21 = vpop.trf.xlu0 }
  0x83   :  { %v155_v22 = vand.u32 2147483647, %v132_v21  ;;  %v190_v26 = vsel %vm188_vm0, %v132_v21, 0.0  ;;  %v153_v50 = vmax.f32 %v132_v21, 0.0 }
  0x85   :  { %v157_v23 = vsub.f32 0.0, %v155_v22 }
  0x86   :  { %v133_v24 = vpop.trf.xlu0 }
  0x87   :  { %v159_v25 = vmul.f32 1.442695, %v157_v23  ;;  %v156_v27 = vand.u32 2147483647, %v133_v24  ;;  %v191_v28 = vsel %vm189_vm1, %v133_v24, 0.0  ;;  %v154_v54 = vmax.f32 %v133_v24, 0.0 }
  0x88   :  { %v192_v29 = vadd.f32 %v191_v28, %v190_v26  ;;  %v231_v24 = vand.u32 127, %v150_v17 }
  0x89   :  { %288 = vpow2.f32 %v159_v25  ;;  %v158_v30 = vsub.f32 0.0, %v156_v27 }
  0x8a   :  { %v193_v31 = vrot.slane %v192_v29, 4  ;;  %vm236_vm4 = vcmp.lt.s32.totalorder %v231_v24, 8 }
  0x8b   :  { %v161_v32 = vmul.f32 1.442695, %v158_v30  ;;  %v235_v30 = vld [vmem:[#allocation2] sm:$0x1] }
  0x8c   :  { %v194_v33 = vadd.f32 %v193_v31, %v192_v29 }
  0x8d   :  { %290 = vpow2.f32 %v161_v32 }
  0x8e   :  { %v195_v34 = vrot.slane %v194_v33, 2 }
  0x90   :  { %v196_v35 = vadd.f32 %v195_v34, %v194_v33 }
  0x92   :  { %v197_v36 = vrot.slane %v196_v35, 1 }
  0x93   :  { %v289_v37 = vpop.eup %288 }
  0x94   :  { %v163_v38 = vadd.f32 1.0, %v289_v37  ;;  %v198_v39 = vadd.f32 %v197_v36, %v196_v35 }
  0x96   :  { %292 = vlog2.f32 %v163_v38  ;;  %v199_v40 = vsub.f32 0.0, %v198_v39  ;;  %v213_v41 = vand.u32 2147483647, %v198_v39  ;;  %v212_v12 = vmax.f32 %v198_v39, 0.0 }
  0x97   :  { %v291_v42 = vpop.eup %290 }
  0x98   :  { %v164_v43 = vadd.f32 1.0, %v291_v42  ;;  %v201_v44 = vand.u32 2147483647, %v199_v40  ;;  %v214_v45 = vsub.f32 0.0, %v213_v41  ;;  %v200_v10 = vmax.f32 %v199_v40, 0.0 }
  0x9a   :  { %294 = vlog2.f32 %v164_v43  ;;  %v202_v46 = vsub.f32 0.0, %v201_v44  ;;  %v215_v47 = vmul.f32 1.442695, %v214_v45 }
  0x9c   :  { %v203_v48 = vmul.f32 1.442695, %v202_v46  ;;  %296 = vpow2.f32 %v215_v47 }
  0x9e   :  { %298 = vpow2.f32 %v203_v48 }
  0xa0   :  { %v293_v49 = vpop.eup %292 }
  0xa1   :  { %v166_v51 = vmul.f32 0.6931472, %v293_v49 }
  0xa3   :  { %v169_v52 = vadd.f32 %v166_v51, %v153_v50 }
  0xa4   :  { %v295_v53 = vpop.eup %294 }
  0xa5   :  { %v168_v55 = vmul.f32 0.6931472, %v295_v53  ;;  %v171_v57 = vsub.f32 0.0, %v169_v52 }
  0xa6   :  { %v297_v56 = vpop.eup %296 }
  0xa7   :  { %v170_v58 = vadd.f32 %v168_v55, %v154_v54  ;;  %v217_v59 = vadd.f32 1.0, %v297_v56  ;;  %v179_v63 = vsel %vm177_vm2, %v171_v57, 0.0 }
  0xa8   :  { %v299_v60 = vpop.eup %298 }
  0xa9   :  { %v172_v61 = vsub.f32 0.0, %v170_v58  ;;  %v205_v62 = vadd.f32 1.0, %v299_v60  ;;  %300 = vlog2.f32 %v217_v59 }
  0xab   :  { %v180_v0 = vsel %vm178_vm3, %v172_v61, 0.0  ;;  %302 = vlog2.f32 %v205_v62 }
  0xac   :  { %v181_v1 = vadd.f32 %v180_v0, %v179_v63 }
  0xae   :  { %v182_v2 = vrot.slane %v181_v1, 4 }
  0xb0   :  { %v183_v3 = vadd.f32 %v182_v2, %v181_v1 }
  0xb2   :  { %v184_v4 = vrot.slane %v183_v3, 2 }
  0xb3   :  { %v301_v5 = vpop.eup %300 }
  0xb4   :  { %v185_v6 = vadd.f32 %v184_v4, %v183_v3  ;;  %v219_v7 = vmul.f32 0.6931472, %v301_v5 }
  0xb5   :  { %v303_v8 = vpop.eup %302 }
  0xb6   :  { %v186_v9 = vrot.slane %v185_v6, 1  ;;  %v207_v11 = vmul.f32 0.6931472, %v303_v8  ;;  %v220_v16 = vadd.f32 %v219_v7, %v212_v12 }
  0xb8   :  { %v187_v14 = vadd.f32 %v186_v9, %v185_v6  ;;  %v208_v15 = vadd.f32 %v207_v11, %v200_v10 }
  0xba   :  { %v209_v18 = vsub.f32 0.0, %v208_v15  ;;  %v221_v19 = vsub.f32 %v187_v14, %v220_v16  ;;  %v211_v22 = vmax.f32 %v187_v14, -16.118095 }
  0xbc   :  { %v210_v21 = vmax.f32 %v209_v18, -16.118095  ;;  %v222_v23 = vmax.f32 %v221_v19, -16.118095 }
  0xbe   :  { %v224_v25 = vadd.f32 %v211_v22, %v210_v21  ;;  %v226_v26 = vmul.f32 %v222_v23, %v148_v13 }
  0xc0   :  { %v225_v27 = vmul.f32 %v224_v25, %v223_v20  ;;  %v227_v28 = vmul.f32 0.7, %v226_v26 }
  0xc2   :  { %v228_v29 = vadd.f32 %v227_v28, %v225_v27 }
  0xc4   :  { %v237_v31 = vsel %vm236_vm4, %v228_v29, 0.0 }
  0xc5   :  { %v238_v32 = vadd.f32 %v237_v31, %v235_v30 }
  0xc7   :  { %239 = vst [vmem:[#allocation2] sm:$0x1] %v238_v32 }
  0xce   :  { %v243_v33 = vld [vmem:[#allocation2] sm:$0x1] }
  0xcf   :  { %v245_v34 = vsel %vm244_vm5, %v243_v33, 0.0 }
  0xd0   :  { %246 = vadd.xlane.f32.xlu1 %v245_v34 }
 0x15d   :  { %v247_v35 = vpop.xlane.xlu1 %246 }
 0x15e   :  { %v248_v36 = vrot.slane %v247_v35, 4 }
 0x160   :  { %v249_v37 = vadd.f32 %v248_v36, %v247_v35 }
 0x162   :  { %v250_v38 = vrot.slane %v249_v37, 2 }
 0x164   :  { %v251_v39 = vadd.f32 %v250_v38, %v249_v37 }
 0x166   :  { %v252_v17 = vrot.slane %v251_v39, 1 }
 0x168   :  { %v253_v40 = vadd.f32 %v252_v17, %v251_v39 }
 0x16a   :  { %284 = vpush %v253_v40 }
 0x19b   :  { %s285_s20 = spop %284 }
 0x19c   :  { %v255_v41 = vstv %s285_s20 }
 0x19d   :  { %256 = vst [vmem:[#allocation3] sm:$0xff] %v255_v41 }
 0x19e   :  { %315 = shalt.err (!%p312_p4)
}
 0x19f   :  { %s316_s24 = scalar_lea.hbm %s421_s3, 128 }
 0x1a0   :  { %p317_p5 = scmp.ne.s32.totalorder %s421_s3, %s316_s24  ;;  %p320_p6 = scmp.lt.u32.totalorder %s316_s24, %s421_s3 }
 0x1a2   :  { %p322_p7 = pnand %p320_p6, %p317_p5 }
 0x1a4   :  { %325 = shalt.err (!%p322_p7)
}
 0x1a5   :  { %266 = dma.vmem_to_hbm [thread:$0]  %s264_s19, 128, %s421_s3, [#allocation4]  }
 0x1a6   :  { %326 = dma.done.wait [#allocation4], 128  }
 0x1a7   :  { %327 = vsyncadd [#allocation4], 4294967168 }
 0x1a8   :  { %270 = vsyncpa [#allocation4], 1 }

</bundles_post_ra>
